<compile_context>
chip_gen: v7x
topology: tpu7x:2x2x1
jax: 0.10.0
libtpu: 0.0.40
codegen_flags: <defaults>
</compile_context>

<pallas_src>
import jax
import jax.numpy as jnp
from jax.experimental import pallas as pl
from jax.experimental.pallas import tpu as pltpu

EPS = 1e-5  # nn.BatchNorm1d default eps


def _round_up(v, m):
    return -(-v // m) * m


# --------------------------------------------------------------------------------------
# Kernel
# --------------------------------------------------------------------------------------
def residual_block_kernel(x_ref, wA_ref, w2_ref, bA_ref, b2_ref, o_ref):
    """One batch tile.

    x_ref  : (TM, IN)        f32 (cast to bf16 in-kernel)
    wA_ref : (IN, 2*OUT)     bf16  = [Linear1(+BN1 folded) | shortcut Linear]
    w2_ref : (OUT, NW2)      bf16  NW2 = 2*OUT (lane-slab mode, zero-padded) or OUT (direct)
    bA_ref : (1, 2*OUT)      f32   [b1_folded | b_shortcut]
    b2_ref : (1, NW2)        f32
    o_ref  : (TM, NW2)       slab mode: lanes [OUT:2*OUT] hold the result; direct: full result
    """
    OUT = w2_ref.shape[0]
    slab = w2_ref.shape[1] == wA_ref.shape[1]  # static Python branch

    x = x_ref[...].astype(wA_ref.dtype)  # f32 -> bf16 on the VPU (no wrapper cast op)

    # Fused matmul for everything that consumes x: one wide MXU push, f32 accumulate.
    z = jnp.dot(x, wA_ref[...], preferred_element_type=jnp.float32) + bA_ref[...]
    # lanes [0:OUT] = BN1(Linear1(x)), lanes [OUT:2*OUT] = shortcut(x)

    # ReLU (Dropout = identity in eval); feed the MXU bf16, keep accumulation in f32.
    h1 = jnp.maximum(z[:, :OUT], 0.0).astype(w2_ref.dtype)

    # Second Linear (+BN2 folded) -> ReLU.
    h2 = jnp.dot(h1, w2_ref[...], preferred_element_type=jnp.float32) + b2_ref[...]
    h2 = jnp.maximum(h2, 0.0)

    if slab:
        # Lane-slab mode (OUT < 128): result lands in lanes [OUT:2*OUT] of a 128-lane-dense
        # slab (unmasked vst); lanes [0:OUT] are don't-care filler sliced away in the wrapper.
        o_ref[...] = (h2 + z).astype(o_ref.dtype)
    else:
        # Direct mode (OUT lane-aligned): write the (TM, OUT) result as-is.
        o_ref[...] = (h2 + z[:, OUT:]).astype(o_ref.dtype)


# --------------------------------------------------------------------------------------
# Parameter packing: BN folding, matmul fusion, bf16 cast (hoisted out of the forward)
# --------------------------------------------------------------------------------------
def pack_params(p, compute_dtype=jnp.bfloat16):
    """Fold eval-mode BN into the Linears and pack operands for the kernel.

    Call once per parameter update, NOT per forward.
    """
    s1 = p["g1"] / jnp.sqrt(p["v1"] + EPS)          # (1, OUT)
    w1f = p["w1"] * s1                              # (IN, OUT)
    b1f = (p["b1"] - p["m1"]) * s1 + p["be1"]       # (1, OUT)

    s2 = p["g2"] / jnp.sqrt(p["v2"] + EPS)
    w2f = p["w2"] * s2                              # (OUT, OUT)
    b2f = (p["b2"] - p["m2"]) * s2 + p["be2"]       # (1, OUT)

    OUT = w1f.shape[1]
    slab = OUT < 128  # lane-slab trick only pays when OUT is not lane-aligned

    # Fuse Linear1 with the shortcut Linear along the output (lane) axis -> 2*OUT wide.
    wA = jnp.concatenate([w1f, p["ws"]], axis=1).astype(compute_dtype)   # (IN, 2*OUT)
    bA = jnp.concatenate([b1f, p["bs"]], axis=1).astype(jnp.float32)     # (1, 2*OUT)

    if slab:
        # Zero-pad Linear2 so its result occupies lanes [OUT:2*OUT] of the output slab.
        w2 = jnp.concatenate([jnp.zeros_like(w2f), w2f], axis=1).astype(compute_dtype)
        b2 = jnp.concatenate([jnp.zeros_like(b2f), b2f], axis=1).astype(jnp.float32)
    else:
        w2 = w2f.astype(compute_dtype)                                   # (OUT, OUT)
        b2 = b2f.astype(jnp.float32)                                     # (1, OUT)

    return {"wA": wA, "bA": bA, "w2": w2, "b2": b2}


# --------------------------------------------------------------------------------------
# Forward wrapper
# --------------------------------------------------------------------------------------
def residual_block(x, packed, *, tm=None, out_dtype=None):
    """x: (B, in_features) f32 (or bf16). packed: output of pack_params."""
    B, IN = x.shape
    wA, bA, w2, b2 = packed["wA"], packed["bA"], packed["w2"], packed["b2"]
    OUT = w2.shape[0]
    N2 = wA.shape[1]                 # 2*OUT
    NW2 = w2.shape[1]                # 2*OUT (slab) or OUT (direct)
    slab = NW2 == N2
    NOUT = N2 if slab else OUT
    out_dtype = out_dtype if out_dtype is not None else x.dtype

    # ---- batch tiling: fixed-ish TM, ragged last tile handled by zero-padding B ----
    if tm is None:
        if B >= 512:
            tm = 256
        elif B > 8:
            tm = _round_up(-(-B // 2), 8)   # aim for >=2 grid steps (v7x megacore)
        else:
            tm = 8
    tm = _round_up(tm, 8)
    Bp = _round_up(B, tm)
    xp = x if Bp == B else jnp.pad(x, ((0, Bp - B), (0, 0)))
    grid = (Bp // tm,)

    # ---- VMEM budgeting (only kicks in for large weights; no-op at small shapes) ----
    x_isz = jnp.dtype(x.dtype).itemsize
    o_isz = jnp.dtype(out_dtype).itemsize
    weight_bytes = wA.size * wA.dtype.itemsize + w2.size * w2.dtype.itemsize
    big_weights = weight_bytes > (8 << 20)

    def weight_spec(shape):
        if big_weights:
            # single-buffer resident weights (constant index_map -> no refetch needed)
            return pl.BlockSpec(shape, lambda i: (0, 0), pipeline_mode=pl.Buffered(1))
        return pl.BlockSpec(shape, lambda i: (0, 0))

    vmem_est = (weight_bytes * (1 if big_weights else 2)
                + 2 * tm * IN * x_isz
                + 2 * tm * NOUT * o_isz
                + 2 * (bA.nbytes + b2.nbytes))
    cp_kwargs = {}
    if vmem_est > (16 << 20):
        cp_kwargs["vmem_limit_bytes"] = min(int(vmem_est * 5 // 4), 60 << 20)

    flops = 2 * Bp * IN * N2 + 2 * Bp * OUT * NW2
    bytes_accessed = (Bp * IN * x_isz + weight_bytes + bA.nbytes + b2.nbytes
                      + Bp * NOUT * o_isz)

    out_full = pl.pallas_call(
        residual_block_kernel,
        out_shape=jax.ShapeDtypeStruct((Bp, NOUT), out_dtype),
        grid=grid,
        in_specs=[
            pl.BlockSpec((tm, IN), lambda i: (i, 0)),   # x batch tile (f32, cast in-kernel)
            weight_spec((IN, N2)),                      # fused [W1' | Ws]   (VMEM-resident)
            weight_spec((OUT, NW2)),                    # W2' (padded only if OUT < 128)
            pl.BlockSpec((1, N2), lambda i: (0, 0)),    # [b1' | bs]
            pl.BlockSpec((1, NW2), lambda i: (0, 0)),   # b2'
        ],
        out_specs=pl.BlockSpec((tm, NOUT), lambda i: (i, 0)),
        compiler_params=pltpu.CompilerParams(
            dimension_semantics=("parallel",), **cp_kwargs),
        cost_estimate=pl.CostEstimate(
            flops=int(flops), transcendentals=0, bytes_accessed=int(bytes_accessed)),
    )(xp, wA, w2, bA, b2)

    if slab:
        return out_full[:B, OUT:]
    return out_full[:B]


# --------------------------------------------------------------------------------------
# Parameters + references
# --------------------------------------------------------------------------------------
def make_params(key, in_features, out_features):
    ks = jax.random.split(key, 12)
    return {
        # Linear weights pre-transposed to (in, out)
        "w1": jax.random.normal(ks[0], (in_features, out_features), jnp.float32) * 0.1,
        "b1": jax.random.normal(ks[1], (1, out_features), jnp.float32) * 0.1,
        "g1": 1.0 + 0.1 * jax.random.normal(ks[2], (1, out_features), jnp.float32),
        "be1": 0.1 * jax.random.normal(ks[3], (1, out_features), jnp.float32),
        "m1": 0.1 * jax.random.normal(ks[4], (1, out_features), jnp.float32),
        "v1": 1.0 + 0.1 * jax.random.uniform(ks[5], (1, out_features), jnp.float32),
        "w2": jax.random.normal(ks[6], (out_features, out_features), jnp.float32) * 0.1,
        "b2": jax.random.normal(ks[7], (1, out_features), jnp.float32) * 0.1,
        "g2": 1.0 + 0.1 * jax.random.normal(ks[8], (1, out_features), jnp.float32),
        "be2": 0.1 * jax.random.normal(ks[9], (1, out_features), jnp.float32),
        "m2": 0.1 * jax.random.normal(ks[10], (1, out_features), jnp.float32),
        "v2": 1.0 + 0.1 * jax.random.uniform(ks[11], (1, out_features), jnp.float32),
        "ws": jax.random.normal(jax.random.fold_in(key, 100),
                                (in_features, out_features), jnp.float32) * 0.1,
        "bs": jax.random.normal(jax.random.fold_in(key, 101),
                                (1, out_features), jnp.float32) * 0.1,
    }


def reference(x, p):
    """Original eval-mode module math, all f32, unfolded (PyTorch semantics)."""
    h = x @ p["w1"] + p["b1"]
    h = (h - p["m1"]) * (p["g1"] / jnp.sqrt(p["v1"] + EPS)) + p["be1"]
    h = jnp.maximum(h, 0.0)
    h = h @ p["w2"] + p["b2"]
    h = (h - p["m2"]) * (p["g2"] / jnp.sqrt(p["v2"] + EPS)) + p["be2"]
    h = jnp.maximum(h, 0.0)
    return h + (x @ p["ws"] + p["bs"])


def reference_folded(x, packed):
    """Same folded/bf16 math the kernel performs, in plain JAX (tight check)."""
    wA, bA, w2, b2 = packed["wA"], packed["bA"], packed["w2"], packed["b2"]
    OUT = w2.shape[0]
    slab = w2.shape[1] == wA.shape[1]
    xb = x.astype(wA.dtype)
    z = jnp.dot(xb, wA, preferred_element_type=jnp.float32) + bA
    h1 = jnp.maximum(z[:, :OUT], 0.0).astype(w2.dtype)
    h2 = jnp.maximum(jnp.dot(h1, w2, preferred_element_type=jnp.float32) + b2, 0.0)
    if slab:
        return (h2 + z)[:, OUT:]
    return h2 + z[:, OUT:]


# --------------------------------------------------------------------------------------
if __name__ == "__main__":
    key = jax.random.PRNGKey(0)

    # Case 1: OUT < 128 -> lane-slab path (2*OUT = 128-lane-dense store, wrapper slice).
    B, IN_F, OUT_F = 8, 32, 64
    kx, kp = jax.random.split(key)
    x = jax.random.normal(kx, (B, IN_F), jnp.float32)
    params = make_params(kp, IN_F, OUT_F)
    packed = pack_params(params)                      # hoisted: once per parameter update
    out = jax.block_until_ready(residual_block(x, packed))
    assert out.shape == (B, OUT_F)
    assert jnp.allclose(out, reference_folded(x, packed), atol=5e-3, rtol=5e-3), \
        "case1: mismatch vs folded reference"
    assert jnp.allclose(out, reference(x, params), atol=1e-1, rtol=5e-2), \
        "case1: mismatch vs f32 reference"

    # Case 2: OUT lane-aligned -> direct path (no zero-pad, no wrapper slice),
    #         ragged batch exercised via zero-padded last tile and a 2-step parallel grid.
    B2, IN2, OUT2 = 20, 32, 128
    kx2, kp2 = jax.random.split(jax.random.fold_in(key, 1))
    x2 = jax.random.normal(kx2, (B2, IN2), jnp.float32)
    params2 = make_params(kp2, IN2, OUT2)
    packed2 = pack_params(params2)
    out2 = jax.block_until_ready(residual_block(x2, packed2))
    assert out2.shape == (B2, OUT2)
    assert jnp.allclose(out2, reference_folded(x2, packed2), atol=5e-3, rtol=5e-3), \
        "case2: mismatch vs folded reference"
    assert jnp.allclose(out2, reference(x2, params2), atol=1e-1, rtol=5e-2), \
        "case2: mismatch vs f32 reference"

    print("KERNEL_OK")
</pallas_src>

<mosaic_0001>
module attributes {stable_mosaic.version = 11 : i64} {
  func.func @residual_block_kernel(%arg0: i32, %arg1: memref<8x32xf32, #tpu.memory_space<vmem>>, %arg2: memref<32x128xbf16, #tpu.memory_space<vmem>>, %arg3: memref<64x128xbf16, #tpu.memory_space<vmem>>, %arg4: memref<1x128xf32, #tpu.memory_space<vmem>>, %arg5: memref<1x128xf32, #tpu.memory_space<vmem>>, %arg6: memref<8x128xf32, #tpu.memory_space<vmem>>) attributes {dimension_semantics = [#tpu.dimension_semantics<parallel>], iteration_bounds = array<i64: 1>, scalar_prefetch = 0 : i64, scratch_operands = 0 : i64, tpu.core_type = #tpu.core_type<tc>, window_params = [{transform_indices = @transform_0, window_bounds = array<i64: 8, 32>}, {pipeline_mode = #tpu.pipeline_mode<synchronous>, transform_indices = @transform_1, window_bounds = array<i64: 32, 128>}, {pipeline_mode = #tpu.pipeline_mode<synchronous>, transform_indices = @transform_2, window_bounds = array<i64: 64, 128>}, {pipeline_mode = #tpu.pipeline_mode<synchronous>, transform_indices = @transform_3, window_bounds = array<i64: 1, 128>}, {pipeline_mode = #tpu.pipeline_mode<synchronous>, transform_indices = @transform_4, window_bounds = array<i64: 1, 128>}, {transform_indices = @transform_5, window_bounds = array<i64: 8, 128>}]} {
    %c0 = arith.constant 0 : index
    %c0_0 = arith.constant 0 : index
    %0 = vector.load %arg1[%c0, %c0_0] : memref<8x32xf32, #tpu.memory_space<vmem>>, vector<8x32xf32>
    %1 = arith.truncf %0 : vector<8x32xf32> to vector<8x32xbf16>
    %c0_1 = arith.constant 0 : index
    %c0_2 = arith.constant 0 : index
    %2 = vector.load %arg2[%c0_1, %c0_2] : memref<32x128xbf16, #tpu.memory_space<vmem>>, vector<32x128xbf16>
    %cst = arith.constant dense<0.000000e+00> : vector<8x128xf32>
    %3 = tpu.matmul %1, %2, %cst {dimension_numbers = #tpu.dot_dimension_numbers<[1], [0], [0], [1], [0, 0, 1, 1], [], []>} : vector<8x32xbf16>, vector<32x128xbf16>, vector<8x128xf32> -> vector<8x128xf32>
    %c0_3 = arith.constant 0 : index
    %c0_4 = arith.constant 0 : index
    %4 = vector.load %arg4[%c0_3, %c0_4] : memref<1x128xf32, #tpu.memory_space<vmem>>, vector<1x128xf32>
    %5 = vector.broadcast %4 : vector<1x128xf32> to vector<8x128xf32>
    %6 = arith.addf %3, %5 : vector<8x128xf32>
    %7 = vector.extract_strided_slice %6 {offsets = [0, 0], sizes = [8, 64], strides = [1, 1]} : vector<8x128xf32> to vector<8x64xf32>
    %cst_5 = arith.constant 0.000000e+00 : f32
    %8 = vector.broadcast %cst_5 : f32 to vector<8x64xf32>
    %9 = arith.maximumf %7, %8 : vector<8x64xf32>
    %10 = arith.truncf %9 : vector<8x64xf32> to vector<8x64xbf16>
    %c0_6 = arith.constant 0 : index
    %c0_7 = arith.constant 0 : index
    %11 = vector.load %arg3[%c0_6, %c0_7] : memref<64x128xbf16, #tpu.memory_space<vmem>>, vector<64x128xbf16>
    %cst_8 = arith.constant dense<0.000000e+00> : vector<8x128xf32>
    %12 = tpu.matmul %10, %11, %cst_8 {dimension_numbers = #tpu.dot_dimension_numbers<[1], [0], [0], [1], [0, 0, 1, 1], [], []>} : vector<8x64xbf16>, vector<64x128xbf16>, vector<8x128xf32> -> vector<8x128xf32>
    %c0_9 = arith.constant 0 : index
    %c0_10 = arith.constant 0 : index
    %13 = vector.load %arg5[%c0_9, %c0_10] : memref<1x128xf32, #tpu.memory_space<vmem>>, vector<1x128xf32>
    %14 = vector.broadcast %13 : vector<1x128xf32> to vector<8x128xf32>
    %15 = arith.addf %12, %14 : vector<8x128xf32>
    %cst_11 = arith.constant 0.000000e+00 : f32
    %16 = vector.broadcast %cst_11 : f32 to vector<8x128xf32>
    %17 = arith.maximumf %15, %16 : vector<8x128xf32>
    %18 = arith.addf %17, %6 : vector<8x128xf32>
    %c0_12 = arith.constant 0 : index
    %c0_13 = arith.constant 0 : index
    %19 = vector.load %arg6[%c0_12, %c0_13] : memref<8x128xf32, #tpu.memory_space<vmem>>, vector<8x128xf32>
    tpu.vector_store %arg6[%c0_12, %c0_13], %18 {strides = array<i32>} : memref<8x128xf32, #tpu.memory_space<vmem>>, vector<8x128xf32>,
    return
  }
  func.func @transform_0(%arg0: i32) -> (i32, i32) {
    %c0_i32 = arith.constant 0 : i32
    %c0_i32_0 = arith.constant 0 : i32
    return %arg0, %c0_i32 : i32, i32
  }
  func.func @transform_1(%arg0: i32) -> (i32, i32) {
    %c0_i32 = arith.constant 0 : i32
    %c0_i32_0 = arith.constant 0 : i32
    %c0_i32_1 = arith.constant 0 : i32
    return %c0_i32, %c0_i32_0 : i32, i32
  }
  func.func @transform_2(%arg0: i32) -> (i32, i32) {
    %c0_i32 = arith.constant 0 : i32
    %c0_i32_0 = arith.constant 0 : i32
    %c0_i32_1 = arith.constant 0 : i32
    return %c0_i32, %c0_i32_0 : i32, i32
  }
  func.func @transform_3(%arg0: i32) -> (i32, i32) {
    %c0_i32 = arith.constant 0 : i32
    %c0_i32_0 = arith.constant 0 : i32
    %c0_i32_1 = arith.constant 0 : i32
    return %c0_i32, %c0_i32_0 : i32, i32
  }
  func.func @transform_4(%arg0: i32) -> (i32, i32) {
    %c0_i32 = arith.constant 0 : i32
    %c0_i32_0 = arith.constant 0 : i32
    %c0_i32_1 = arith.constant 0 : i32
    return %c0_i32, %c0_i32_0 : i32, i32
  }
  func.func @transform_5(%arg0: i32) -> (i32, i32) {
    %c0_i32 = arith.constant 0 : i32
    %c0_i32_0 = arith.constant 0 : i32
    return %arg0, %c0_i32 : i32, i32
  }
}

</mosaic_0001>

<bundles_post_ra>
// kernel: tpu_custom_call.1
= control target key start
LH: loop header
LB: loop body
LE: loop exit
PB: predicated region body
PF: predicated region fallthrough
CT: control target
= control target key end

     0   :  { %10 = vsyncpa [#allocation3], 0  ;;  %s478_s0 = inlined_call_operand.hbm [shape: f32[8,32], index: 0, kind: input, shape index: {}]   ;;  %s479_s1 = inlined_call_operand.hbm [shape: bf16[32,128], index: 1, kind: input, shape index: {}]   ;;  %s480_s2 = inlined_call_operand.hbm [shape: bf16[64,128], index: 2, kind: input, shape index: {}]   ;;  %s481_s3 = inlined_call_operand.vmem [shape: f32[1,128], index: 3, kind: input, shape index: {}]   ;;  %s482_s4 = inlined_call_operand.vmem [shape: f32[1,128], index: 4, kind: input, shape index: {}]   ;;  %s483_s5 = inlined_call_operand.hbm [shape: f32[8,128], index: 5, kind: output, shape index: {}]  }
   0x1   :  { %11 = vsyncpa [#allocation6], 0 }
   0x2   :  { %12 = vsyncpa [#allocation4], 0  ;;  %s380_s18 = smov [#allocation5]   ;;  %s286_s22 = scalar_lea.hbm %s479_s1, 256 }
   0x3   :  { %s28_s19 = sshll.u32 %s380_s18, 4  ;;  %p287_p0 = scmp.ne.s32.totalorder %s479_s1, %s286_s22  ;;  %s29_s19 = int_to_ptr.vmem [resolvable:$true] %s28_s19 }
   0x4   :  { %p290_p1 = scmp.lt.u32.totalorder %s286_s22, %s479_s1 }
   0x6   :  { %p292_p2 = pnand %p290_p1, %p287_p0 }
   0x8   :  { %295 = shalt.err (!%p292_p2)
}
   0x9   :  { %s296_s27 = scalar_lea.vmem %s29_s19, 256  ;;  %p301_p4 = scmp.lt.s32.totalorder %s29_s19, %s29_s19 }
   0xa   :  { %p297_p3 = scmp.ne.s32.totalorder %s29_s19, %s296_s27  ;;  %p302_p5 = scmp.lt.s32.totalorder %s296_s27, %s296_s27 }
   0xc   :  { %p303_p6 = por %p302_p5, %p301_p4 }
   0xe   :  { %p304_p7 = pnand %p303_p6, %p297_p3 }
  0x10   :  { %307 = shalt.err (!%p304_p7)
}
  0x11   :  { %s381_s28 = smov 64   ;;  %s382_s29 = smov 4  }
  0x12   :  { %34 = dma.hbm_to_vmem [thread:$0]  %s479_s1, 256, %s29_s19, [#allocation6], %s381_s28, %s381_s28, %s382_s29  }
  0x13   :  { %s383_s7 = smov [#allocation2]   ;;  %s384_s9 = smov [#allocation7]  }
  0x14   :  { %s19_s8 = sshll.u32 %s383_s7, 4  ;;  %s40_s10 = sshll.u32 %s384_s9, 4  ;;  %s20_s8 = int_to_ptr.vmem [resolvable:$true] %s19_s8  ;;  %s41_s10 = int_to_ptr.vmem [resolvable:$true] %s40_s10 }
  0x15   :  { %s308_s13 = scalar_lea.hbm %s478_s0, 128 }
  0x16   :  { %p309_p8 = scmp.ne.s32.totalorder %s478_s0, %s308_s13  ;;  %p312_p9 = scmp.lt.u32.totalorder %s308_s13, %s478_s0 }
  0x18   :  { %p314_p10 = pnand %p312_p9, %p309_p8 }
  0x1a   :  { %317 = shalt.err (!%p314_p10)
}
  0x1b   :  { %s318_s1 = scalar_lea.vmem %s20_s8, 128  ;;  %p323_p12 = scmp.lt.s32.totalorder %s20_s8, %s20_s8 }
  0x1c   :  { %p319_p11 = scmp.ne.s32.totalorder %s20_s8, %s318_s1  ;;  %p324_p13 = scmp.lt.s32.totalorder %s318_s1, %s318_s1 }
  0x1e   :  { %p325_p0 = por %p324_p13, %p323_p12 }
  0x20   :  { %p326_p1 = pnand %p325_p0, %p319_p11 }
  0x22   :  { %329 = shalt.err (!%p326_p1)
}
  0x23   :  { %22 = dma.hbm_to_vmem [thread:$0]  %s478_s0, 128, %s20_s8, [#allocation3]  }
  0x24   :  { %s330_s22 = scalar_lea.hbm %s480_s2, 512 }
  0x25   :  { %p331_p2 = scmp.ne.s32.totalorder %s480_s2, %s330_s22  ;;  %p334_p3 = scmp.lt.u32.totalorder %s330_s22, %s480_s2 }
  0x27   :  { %p336_p4 = pnand %p334_p3, %p331_p2 }
  0x29   :  { %339 = shalt.err (!%p336_p4)
}
  0x2a   :  { %s340_s27 = scalar_lea.vmem %s41_s10, 512  ;;  %p345_p6 = scmp.lt.s32.totalorder %s41_s10, %s41_s10 }
  0x2b   :  { %p341_p5 = scmp.ne.s32.totalorder %s41_s10, %s340_s27  ;;  %p346_p7 = scmp.lt.s32.totalorder %s340_s27, %s340_s27 }
  0x2d   :  { %p347_p8 = por %p346_p7, %p345_p6 }
  0x2f   :  { %p348_p9 = pnand %p347_p8, %p341_p5 }
  0x31   :  { %351 = shalt.err (!%p348_p9)
}
  0x32   :  { %46 = dma.hbm_to_vmem [thread:$0]  %s480_s2, 512, %s41_s10, [#allocation6], %s381_s28, %s381_s28, %s382_s29  }
  0x33   :  { %374 = dma.done.wait [#allocation3], 128  }
  0x34   :  { %375 = vsyncadd [#allocation3], 4294967168 }
  0x35   :  { %376 = dma.done.wait [#allocation6], 768  }
  0x36   :  { %377 = vsyncadd [#allocation6], 4294966528  ;;  %v385_v0 = vmov 0.0   ;;  %vm386_vm0 = vmmov 0   ;;  %v280_v1 = vld [vmem:[#allocation5] sm:$0xff]   ;;  %v281_v2 = vld [vmem:[#allocation5 + $0x8] sm:$0xff]  }
  0x37   :  { %252 = vmatprep.subr.bf16.mxu0 %v385_v0  ;;  %256 = vmatprep.mubr.msk.bf16.mxu0 %vm386_vm0, %v385_v0  ;;  %v61_v3 = vld [vmem:[#allocation2] sm:$0xff]  ;;  %v282_v4 = vld [vmem:[#allocation7] sm:$0xff]   ;;  %vm86_vm1 = vcmask 261120   ;;  %v284_v7 = vld [vmem:[#allocation7 + $0x10] sm:$0xff]   ;;  %vm171_vm2 = vcmask 523264   ;;  %s387_s7 = smov [#allocation8]  }
  0x38   :  { %260 = vmatprep.subr.bf16.mxu1 %v385_v0  ;;  %268 = vmatprep.mubr.msk.bf16.mxu1 %vm386_vm0, %v385_v0  ;;  %v283_v5 = vld [vmem:[#allocation7 + $0x8] sm:$0xff]   ;;  %v62_v6 = vpack.c.bf16 %v61_v3, %v61_v3  ;;  %v285_v8 = vld [vmem:[#allocation7 + $0x18] sm:$0xff]   ;;  %s224_s8 = sshll.u32 %s387_s7, 4  ;;  %s225_s8 = int_to_ptr.vmem [resolvable:$true] %s224_s8 }
  0x39   :  { %253 = vmatpush3.bf16.msra.mxu0 %v280_v1  ;;  %261 = vmatpush3.bf16.msra.mxu1 %v282_v4  ;;  %v234_v9 = vld [vmem:[%s481_s3] ss:$0 sm:$0xff]  ;;  %s352_s3 = scalar_lea.vmem %s225_s8, 128  ;;  %p357_p11 = scmp.lt.s32.totalorder %s225_s8, %s225_s8 }
  0x3a   :  { %254 = vmatprep.subr.bf16.mxu0 %v385_v0  ;;  %262 = vmatprep.subr.bf16.mxu1 %v385_v0  ;;  %v238_v17 = vld [vmem:[%s482_s4] ss:$0 sm:$0xff]  ;;  %p353_p10 = scmp.ne.s32.totalorder %s225_s8, %s352_s3  ;;  %p358_p12 = scmp.lt.s32.totalorder %s352_s3, %s352_s3 }
  0x3c   :  { %p359_p13 = por %p358_p12, %p357_p11 }
  0x3d   :  { %255 = vmatpush3.bf16.msra.mxu0 %v281_v2  ;;  %263 = vmatpush3.bf16.msra.mxu1 %v283_v5 }
  0x3e   :  { %264 = vmatprep.subr.bf16.mxu1 %v385_v0  ;;  %p360_p0 = pnand %p359_p13, %p353_p10 }
  0x40   :  { %257 = vmatmul.mubr.msk.bf16.vlgmr.msra.gmra.mrb[0].mxu0 %vm86_vm1, %v62_v6 }
  0x41   :  { %265 = vmatpush3.bf16.msra.mxu1 %v284_v7 }
  0x42   :  { %266 = vmatprep.subr.bf16.mxu1 %v385_v0 }
  0x45   :  { %267 = vmatpush3.bf16.msra.mxu1 %v285_v8 }
 0x113   :  { %v124_v10 = vpop.f32.mrb[0].mxu0 }
 0x114   :  { %v125_v11 = vadd.f32 %v234_v9, %v124_v10  ;;  %v258_v12 = vpop.f32.mrb[1].mxu0 }
 0x115   :  { %v127_v13 = vpop.f32.mrb[2].mxu0 }
 0x116   :  { %v130_v14 = vmax.f32 %v125_v11, 0.0  ;;  %v259_v15 = vpop.f32.mrb[3].mxu0 }
 0x118   :  { %v131_v16 = vpack.c.bf16 %v130_v14, %v130_v14 }
 0x11a   :  { %269 = vmatmul.mubr.msk.bf16.vlgmr.msra.gmra.mrb[0].mxu1 %vm171_vm2, %v131_v16 }
 0x1ed   :  { %v209_v18 = vpop.f32.mrb[0].mxu1 }
 0x1ee   :  { %v210_v19 = vadd.f32 %v238_v17, %v209_v18  ;;  %v270_v20 = vpop.f32.mrb[1].mxu1 }
 0x1ef   :  { %v212_v21 = vpop.f32.mrb[2].mxu1 }
 0x1f0   :  { %v215_v22 = vmax.f32 %v210_v19, 0.0  ;;  %v271_v23 = vpop.f32.mrb[3].mxu1 }
 0x1f2   :  { %v216_v24 = vadd.f32 %v215_v22, %v125_v11 }
 0x1f4   :  { %217 = vst [vmem:[#allocation8] sm:$0xff] %v216_v24 }
 0x1f5   :  { %363 = shalt.err (!%p360_p0)
}
 0x1f6   :  { %s364_s10 = scalar_lea.hbm %s483_s5, 128 }
 0x1f7   :  { %p365_p1 = scmp.ne.s32.totalorder %s483_s5, %s364_s10  ;;  %p368_p2 = scmp.lt.u32.totalorder %s364_s10, %s483_s5 }
 0x1f9   :  { %p370_p3 = pnand %p368_p2, %p365_p1 }
 0x1fb   :  { %373 = shalt.err (!%p370_p3)
}
 0x1fc   :  { %227 = dma.vmem_to_hbm [thread:$0]  %s225_s8, 128, %s483_s5, [#allocation4]  }
 0x1fd   :  { %378 = dma.done.wait [#allocation4], 128  }
 0x1fe   :  { %379 = vsyncadd [#allocation4], 4294967168 }
 0x1ff   :  { %231 = vsyncpa [#allocation3], 1 }
 0x200   :  { %232 = vsyncpa [#allocation6], 1 }
 0x201   :  { %233 = vsyncpa [#allocation4], 1 }

</bundles_post_ra>
